<compile_context>
chip_gen: v6e
topology: v6e:2x2x1
jax: 0.10.0
libtpu: 0.0.40
codegen_flags: <defaults>
</compile_context>

<pallas_src>
import functools

import jax
import jax.numpy as jnp
import numpy as np
from jax.experimental import pallas as pl
from jax.experimental.pallas import tpu as pltpu

_MAX_TM = 512    # rows  (N*C) tile
_MAX_TN = 1024   # cols  (H*W) tile, f32 -> 2 MiB per data tile


def _round_up(x, m):
    return ((x + m - 1) // m) * m


def _dropout2d_kernel(x_ref, scale_ref, o_ref):
    # x_ref: (TM, TN) tile of the (N*C, H*W) slab.
    # scale_ref: (TM, 1) per-row scale (0.0 dropped, 1/(1-p) kept), broadcast
    # over lanes by the VPU.  Pure HBM-bandwidth-bound multiply.
    o_ref[...] = (x_ref[...] * scale_ref[...]).astype(o_ref.dtype)


@functools.partial(jax.jit, static_argnames=("p",))
def _dropout2d_pallas(x, seed, p):
    """Channel-wise (2d) dropout on an NCHW tensor via a tiled Pallas kernel."""
    assert 0.0 < p < 1.0  # p==0 / p==1 handled by fast paths in the wrapper
    N, C, H, W = x.shape
    rows, cols = N * C, H * W
    x2 = x.reshape(rows, cols)

    # One Bernoulli(1-p) draw per (n, c) channel, folded into a per-row scale.
    # TODO(synk): torch.manual_seed's exact RNG bit-stream is not reproducible
    # in JAX; only the dropout2d distribution matches, not specific masks.
    key = jax.random.PRNGKey(seed)
    keep = jax.random.uniform(key, (rows, 1), dtype=jnp.float32) >= jnp.float32(p)
    row_scale = jnp.where(
        keep, jnp.float32(1.0 / (1.0 - p)), jnp.float32(0.0)
    ).astype(x.dtype)

    # Tile selection: full-extent block when the dim fits (always legal),
    # otherwise an (8,128)-aligned tile with Pallas masking the ragged edge.
    TM = rows if rows <= _MAX_TM else _MAX_TM
    TN = cols if cols <= _MAX_TN else _MAX_TN
    # Give v7x's two TensorCores at least two parallel blocks when possible.
    if rows >= 16 and pl.cdiv(rows, TM) == 1 and pl.cdiv(cols, TN) == 1:
        TM = _round_up(pl.cdiv(rows, 2), 8)
    grid = (pl.cdiv(rows, TM), pl.cdiv(cols, TN))

    out = pl.pallas_call(
        _dropout2d_kernel,
        out_shape=jax.ShapeDtypeStruct((rows, cols), x.dtype),
        grid=grid,
        in_specs=[
            pl.BlockSpec((TM, TN), lambda i, j: (i, j)),  # data tile
            pl.BlockSpec((TM, 1), lambda i, j: (i, 0)),   # per-row scale
        ],
        out_specs=pl.BlockSpec((TM, TN), lambda i, j: (i, j)),
        compiler_params=pltpu.CompilerParams(
            dimension_semantics=("parallel", "parallel")),
        cost_estimate=pl.CostEstimate(
            flops=rows * cols,
            transcendentals=0,
            bytes_accessed=2 * rows * cols * x.dtype.itemsize),
    )(x2, row_scale)

    return out.reshape(N, C, H, W)


class MyDropout:
    """Mirrors the PyTorch MyDropout module's forward semantics."""

    def __init__(self, p=0.5):
        self.p = float(p)
        self.seed = 0
        self.training = True

    def __call__(self, x, freeze=False):
        if not self.training:
            return x
        if not freeze:
            self.seed = int(np.random.randint(10000000, size=1)[0])
        if self.p <= 0.0:
            return x
        if self.p >= 1.0:          # torch allows p==1: everything dropped
            return jnp.zeros_like(x)
        # Seed passed as a traced array so new seeds don't trigger recompiles.
        return _dropout2d_pallas(x, jnp.int32(self.seed), self.p)


if __name__ == "__main__":
    np.random.seed(0)  # deterministic seed selection (stand-in for torch flow)

    key = jax.random.PRNGKey(0)
    x = jax.random.normal(key, (2, 4, 16, 16), dtype=jnp.float32)

    drop = MyDropout(p=0.5)
    y = jax.block_until_ready(drop(x, freeze=False))

    # Sanity: every (n, c) channel is either identically zero or x * 1/(1-p).
    xr = np.asarray(x).reshape(8, -1)
    yr = np.asarray(y).reshape(8, -1)
    scale = 1.0 / (1.0 - drop.p)
    for r in range(xr.shape[0]):
        dropped = np.allclose(yr[r], 0.0)
        kept = np.allclose(yr[r], xr[r] * scale, rtol=1e-5, atol=1e-5)
        assert dropped or kept, f"row {r}: not a clean channel-wise dropout"

    # Frozen seed: identical mask on a second call.
    y2 = jax.block_until_ready(drop(x, freeze=True))
    assert np.allclose(np.asarray(y), np.asarray(y2))

    # Eval mode: identity.
    drop.training = False
    y_eval = jax.block_until_ready(drop(x))
    assert np.allclose(np.asarray(y_eval), np.asarray(x))
    drop.training = True

    # Non-(8,128)-aligned shape: full-extent blocks, no padding round-trips.
    x_odd = jax.random.normal(jax.random.PRNGKey(1), (2, 3, 7, 7), jnp.float32)
    y_odd = jax.block_until_ready(drop(x_odd, freeze=False))
    xo = np.asarray(x_odd).reshape(6, -1)
    yo = np.asarray(y_odd).reshape(6, -1)
    for r in range(xo.shape[0]):
        dropped = np.allclose(yo[r], 0.0)
        kept = np.allclose(yo[r], xo[r] * scale, rtol=1e-5, atol=1e-5)
        assert dropped or kept, f"odd-shape row {r}: not clean channel dropout"

    print("KERNEL_OK")
</pallas_src>

<mosaic_0001>
module attributes {stable_mosaic.version = 11 : i64} {
  func.func @_dropout2d_kernel(%arg0: i32, %arg1: i32, %arg2: memref<8x256xf32, #tpu.memory_space<vmem>>, %arg3: memref<8x1xf32, #tpu.memory_space<vmem>>, %arg4: memref<8x256xf32, #tpu.memory_space<vmem>>) attributes {dimension_semantics = [#tpu.dimension_semantics<parallel>, #tpu.dimension_semantics<parallel>], iteration_bounds = array<i64: 1, 1>, scalar_prefetch = 0 : i64, scratch_operands = 0 : i64, tpu.core_type = #tpu.core_type<tc>, window_params = [{transform_indices = @transform_0, window_bounds = array<i64: 8, 256>}, {transform_indices = @transform_1, window_bounds = array<i64: 8, 1>}, {transform_indices = @transform_2, window_bounds = array<i64: 8, 256>}]} {
    %c0 = arith.constant 0 : index
    %c0_0 = arith.constant 0 : index
    %0 = vector.load %arg2[%c0, %c0_0] : memref<8x256xf32, #tpu.memory_space<vmem>>, vector<8x256xf32>
    %c0_1 = arith.constant 0 : index
    %c0_2 = arith.constant 0 : index
    %1 = vector.load %arg3[%c0_1, %c0_2] : memref<8x1xf32, #tpu.memory_space<vmem>>, vector<8x1xf32>
    %2 = vector.broadcast %1 : vector<8x1xf32> to vector<8x256xf32>
    %3 = arith.mulf %0, %2 : vector<8x256xf32>
    %c0_3 = arith.constant 0 : index
    %c0_4 = arith.constant 0 : index
    %4 = vector.load %arg4[%c0_3, %c0_4] : memref<8x256xf32, #tpu.memory_space<vmem>>, vector<8x256xf32>
    tpu.vector_store %arg4[%c0_3, %c0_4], %3 {strides = array<i32>} : memref<8x256xf32, #tpu.memory_space<vmem>>, vector<8x256xf32>,
    return
  }
  func.func @transform_0(%arg0: i32, %arg1: i32) -> (i32, i32) {
    %c0_i32 = arith.constant 0 : i32
    return %arg0, %arg1 : i32, i32
  }
  func.func @transform_1(%arg0: i32, %arg1: i32) -> (i32, i32) {
    %c0_i32 = arith.constant 0 : i32
    %c0_i32_0 = arith.constant 0 : i32
    return %arg0, %c0_i32 : i32, i32
  }
  func.func @transform_2(%arg0: i32, %arg1: i32) -> (i32, i32) {
    %c0_i32 = arith.constant 0 : i32
    return %arg0, %arg1 : i32, i32
  }
}

</mosaic_0001>

<bundles_post_ra>
// kernel: _dropout2d_pallas.1
= control target key start
LH: loop header
LB: loop body
LE: loop exit
PB: predicated region body
PF: predicated region fallthrough
CT: control target
= control target key end

     0   :  { %v29_v0 = vmov 0   ;;  %s60_s1 = inlined_call_operand.vmem [shape: f32[8,1], index: 1, kind: input, shape index: {}]   ;;  %s61_s0 = inlined_call_operand.vmem [shape: f32[8,256], index: 0, kind: input, shape index: {}]   ;;  %s62_s2 = inlined_call_operand.vmem [shape: f32[8,256], index: 2, kind: output, shape index: {}]  }
   0x1   :  { %28 = vset.pattern.permute.xlu0 %v29_v0  ;;  %v13_v1 = vld [vmem:[%s60_s1] sm:$0xff]  ;;  %v12_v3 = vld [vmem:[%s61_s0 + $0x8] sm:$0xff] }
   0x2   :  { %16 = vperm.xlu0 %28, %v13_v1   ;;  %v11_v2 = vld [vmem:[%s61_s0] sm:$0xff] }
  0x7d   :  { %v17_v4 = vpop.permute.xlu0 %16 }
  0x7e   :  { %v19_v5 = vmul.f32 %v17_v4, %v11_v2  ;;  %v20_v6 = vmul.f32 %v17_v4, %v12_v3 }
  0x80   :  { %21 = vst [vmem:[%s62_s2] sm:$0xff] %v19_v5  ;;  %22 = vst [vmem:[%s62_s2 + $0x8] sm:$0xff] %v20_v6 }

</bundles_post_ra>
